<compile_context>
chip_gen: v5e
topology: v5e:2x2
jax: 0.10.0
libtpu: 0.0.40
codegen_flags: <defaults>
</compile_context>

<pallas_src>
import functools

import jax
import jax.numpy as jnp
import numpy as np
from jax.experimental import pallas as pl
from jax.experimental.pallas import tpu as pltpu

_COLS = 1024            # lanes per row: 8 full (8,128) vregs per sublane group
_STRIP_ROWS = 8         # strip = (8, 1024) -> 8 vregs, vreg-resident chain
_MAX_BLOCK_ROWS = 512   # 512*1024*4 B = 2 MiB f32 block (v5e-safe, 85%+ roofline)
_SINGLE_BLOCK_ROWS = 64 # <= 256 KiB: just do one block, no pipelining needed


def _ceil_to(x, m):
    return -(-x // m) * m


def _tile_layout(n):
    """Choose (block_rows, grid) with equal full blocks; even grid when > 1."""
    rows = _ceil_to(max(n, 1), _COLS) // _COLS
    rows = _ceil_to(rows, _STRIP_ROWS)
    if rows <= _SINGLE_BLOCK_ROWS:
        return rows, 1
    grid = max(2, -(-rows // _MAX_BLOCK_ROWS))
    if grid % 2:
        grid += 1                                   # balance v7x megacore
    block_rows = _ceil_to(-(-rows // grid), _STRIP_ROWS)
    return block_rows, grid


def _mixture_kernel(n_valid, a_ref, b_ref, c_ref, k_ref, x_ref, o_ref, psum_ref):
    """Unnormalized mixture + per-block masked partial sum.

    o = | k + sum_j a_j * tanh(b_j*x + c_j) |
    a/b/c: (n_sig,) folded per-sigmoid scalars in SMEM.  k: (1,) constant term.
    x/o:   (block_rows, 1024) f32 VMEM tiles.  psum: (1, 8, 128) per-block sum
    (broadcast scalar; wrapper reads [0,0]).  n_valid: static unpadded length.
    """
    block_rows = x_ref.shape[0]
    n_sig = a_ref.shape[0]                       # static & small -> unrolled
    n_strips = block_rows // _STRIP_ROWS

    # Flat element index of each lane within a strip (hoisted, loop-invariant).
    row_i = jax.lax.broadcasted_iota(jnp.int32, (_STRIP_ROWS, _COLS), 0)
    col_i = jax.lax.broadcasted_iota(jnp.int32, (_STRIP_ROWS, _COLS), 1)
    strip_iota = row_i * _COLS + col_i

    blk_base = pl.program_id(0) * (block_rows * _COLS)

    def strip_body(i, total):
        r0 = pl.multiple_of(i * _STRIP_ROWS, _STRIP_ROWS)
        inp = x_ref[pl.ds(r0, _STRIP_ROWS), :]            # (8, 1024) vreg-resident
        acc = jnp.full_like(inp, k_ref[0])                 # constant folded into init
        for s in range(n_sig):                             # static unroll
            acc = acc + a_ref[s] * jnp.tanh(inp * b_ref[s] + c_ref[s])  # EUP + VPU
        out = jnp.abs(acc)
        o_ref[pl.ds(r0, _STRIP_ROWS), :] = out             # lane-dense unmasked store
        # Partial sum; padded tail elements must not contribute.
        limit = n_valid - (blk_base + r0 * _COLS)
        masked = jnp.where(strip_iota < limit, out, jnp.float32(0.0))
        return total + jnp.sum(masked)

    block_sum = jax.lax.fori_loop(0, n_strips, strip_body, jnp.float32(0.0))
    psum_ref[...] = jnp.full(psum_ref.shape, block_sum, dtype=jnp.float32)


def _maybe_host(*xs):
    """Return numpy copies if all args are concrete, else None (tracer-safe)."""
    try:
        return [np.asarray(x) for x in xs]
    except Exception:
        return None


def mixture_model(inp, slopesX, scalesX, cX, slopesY, scalesY, cY, d):
    """inp: (N,) f32. Returns (N,) f32 normalized mixture output."""
    f32 = jnp.float32
    N = int(inp.shape[0])
    slopesX = slopesX.astype(f32); scalesX = scalesX.astype(f32); cX = cX.astype(f32)
    slopesY = slopesY.astype(f32); scalesY = scalesY.astype(f32); cY = cY.astype(f32)
    d = jnp.asarray(d, f32)

    # Fold scalars (O(sig_num) work outside the kernel's hot loop).
    aX = 0.5 * scalesX * scalesX
    aY = 0.5 * scalesY * scalesY
    const = (jnp.sum(aX) - jnp.sum(aY) + d * d).reshape(1).astype(f32)

    host = _maybe_host(slopesX, cX, slopesY, cY)
    if (host is not None and host[0].shape == host[2].shape
            and np.array_equal(host[0], host[2]) and np.array_equal(host[1], host[3])):
        # X and Y share slopes & centers (module default init): merge coefficients,
        # halving the tanh/VALU work per element.
        a = aX - aY
        b = 0.5 * slopesX
        c = -0.5 * cX * slopesX
    else:
        a = jnp.concatenate([aX, -aY])                      # Y terms subtract
        b = 0.5 * jnp.concatenate([slopesX, slopesY])
        c = -0.5 * jnp.concatenate([cX * slopesX, cY * slopesY])

    # Layout plumbing: equal full blocks, even grid when > 1 (v7x balance).
    block_rows, grid = _tile_layout(N)
    rows = block_rows * grid
    n_pad = rows * _COLS
    x2 = jnp.pad(inp.astype(f32), (0, n_pad - N)).reshape(rows, _COLS)

    n_sig = int(a.shape[0])
    smem = pl.BlockSpec(memory_space=pltpu.MemorySpace.SMEM)
    z, psums = pl.pallas_call(
        functools.partial(_mixture_kernel, N),
        out_shape=(jax.ShapeDtypeStruct((rows, _COLS), f32),
                   jax.ShapeDtypeStruct((grid, 8, 128), f32)),
        grid=(grid,),
        in_specs=[smem, smem, smem, smem,
                  pl.BlockSpec((block_rows, _COLS), lambda i: (i, 0))],
        out_specs=(pl.BlockSpec((block_rows, _COLS), lambda i: (i, 0)),
                   pl.BlockSpec((1, 8, 128), lambda i: (i, 0, 0))),
        compiler_params=pltpu.CompilerParams(
            dimension_semantics=("parallel",)),
        cost_estimate=pl.CostEstimate(
            flops=4 * n_sig * n_pad,
            transcendentals=n_sig * n_pad,
            bytes_accessed=8 * n_pad + grid * 8 * 128 * 4),
    )(a, b, c, const, x2)

    total = jnp.sum(psums[:, 0, 0])          # tiny reduce over per-block partials
    return z.reshape(-1)[:N] / total         # single elementwise scale pass


def mixture_model_ref(inp, slopesX, scalesX, cX, slopesY, scalesY, cY, d):
    """Pure-JAX reference mirroring the PyTorch forward."""
    x = jnp.outer(inp, slopesX) - cX * slopesX
    x = jax.nn.sigmoid(x)
    x = jnp.sum((scalesX * scalesX) * x, axis=1)
    y = jnp.outer(inp, slopesY) - cY * slopesY
    y = jax.nn.sigmoid(y)
    y = jnp.sum((scalesY * scalesY) * y, axis=1)
    z = jnp.abs(x - y + d * d)
    return z / jnp.sum(z)


if __name__ == "__main__":
    # Synthetic "args": sig_num sigmoids, slope, bias, range_begin.
    sig_num = 8
    slope = 25.0
    bias = 0.01
    range_begin = 1.0

    key = jax.random.PRNGKey(0)
    k_sx, k_sy, k1, k2, k3, k4 = jax.random.split(key, 6)

    # Deterministic parameter init (mirrors random_init=True + linspace centers).
    scalesX = jax.random.uniform(k_sx, (sig_num,), dtype=jnp.float32)
    scalesY = jax.random.uniform(k_sy, (sig_num,), dtype=jnp.float32)
    slopesX = jnp.full((sig_num,), slope, dtype=jnp.float32)
    slopesY = jnp.full((sig_num,), slope, dtype=jnp.float32)
    cX = jnp.asarray(np.linspace(-range_begin, range_begin, sig_num), dtype=jnp.float32)
    cY = jnp.asarray(np.linspace(-range_begin, range_begin, sig_num), dtype=jnp.float32)
    d = jnp.asarray(bias, dtype=jnp.float32)

    # Distinct Y centers: exercises the general (non-deduped, 16-term) path.
    cY_alt = jnp.asarray(np.linspace(-0.5 * range_begin, 0.5 * range_begin, sig_num),
                         dtype=jnp.float32)

    # N=256: module-scale case (single block).
    # N=20000: single larger block + masked partial-sum tail.
    # N=140000: multi-block even grid with full equal blocks + masked tail.
    # N=5000 with cY_alt: non-dedupe path.
    cases = [(256, k1, cY), (20000, k2, cY), (140000, k3, cY), (5000, k4, cY_alt)]
    for n_elem, k, cy in cases:
        inp = jax.random.uniform(k, (n_elem,), dtype=jnp.float32,
                                 minval=-range_begin, maxval=range_begin)
        out = jax.block_until_ready(
            mixture_model(inp, slopesX, scalesX, cX, slopesY, scalesY, cy, d))
        ref = mixture_model_ref(inp, slopesX, scalesX, cX, slopesY, scalesY, cy, d)
        np.testing.assert_allclose(np.asarray(out), np.asarray(ref),
                                   rtol=1e-4, atol=1e-6)
        assert abs(float(out.sum()) - 1.0) < 1e-4

    print("KERNEL_OK")
</pallas_src>

<mosaic_0001>
module attributes {stable_mosaic.version = 11 : i64} {
  func.func @_mixture_kernel(%arg0: i32, %arg1: memref<8xf32, #tpu.memory_space<smem>>, %arg2: memref<8xf32, #tpu.memory_space<smem>>, %arg3: memref<8xf32, #tpu.memory_space<smem>>, %arg4: memref<1xf32, #tpu.memory_space<smem>>, %arg5: memref<8x1024xf32, #tpu.memory_space<vmem>>, %arg6: memref<8x1024xf32, #tpu.memory_space<vmem>>, %arg7: memref<1x8x128xf32, #tpu.memory_space<vmem>>) attributes {dimension_semantics = [#tpu.dimension_semantics<parallel>], iteration_bounds = array<i64: 1>, scalar_prefetch = 0 : i64, scratch_operands = 0 : i64, tpu.core_type = #tpu.core_type<tc>, window_params = [{transform_indices = @transform_0, window_bounds = array<i64: 8>}, {transform_indices = @transform_1, window_bounds = array<i64: 8>}, {transform_indices = @transform_2, window_bounds = array<i64: 8>}, {transform_indices = @transform_3, window_bounds = array<i64: 1>}, {transform_indices = @transform_4, window_bounds = array<i64: 8, 1024>}, {transform_indices = @transform_5, window_bounds = array<i64: 8, 1024>}, {transform_indices = @transform_6, window_bounds = array<i64: 1, 8, 128>}]} {
    %0 = tpu.iota {dimensions = array<i32: 0>} : vector<8x1024xi32>
    %1 = tpu.iota {dimensions = array<i32: 1>} : vector<8x1024xi32>
    %c1024_i32 = arith.constant 1024 : i32
    %2 = vector.broadcast %c1024_i32 : i32 to vector<8x1024xi32>
    %3 = arith.muli %0, %2 : vector<8x1024xi32>
    %4 = arith.addi %3, %1 : vector<8x1024xi32>
    %c8192_i32 = arith.constant 8192 : i32
    %5 = arith.muli %arg0, %c8192_i32 : i32
    %cst = arith.constant 0.000000e+00 : f32
    %c0_i32 = arith.constant 0 : i32
    %c8_i32 = arith.constant 8 : i32
    %6 = arith.muli %c0_i32, %c8_i32 : i32
    %7 = tpu.assume_multiple %6, 8 : i32
    %8 = arith.index_cast %7 : i32 to index
    %c0 = arith.constant 0 : index
    %9 = vector.load %arg5[%8, %c0] : memref<8x1024xf32, #tpu.memory_space<vmem>>, vector<8x1024xf32>
    %c0_0 = arith.constant 0 : index
    %10 = memref.load %arg4[%c0_0] : memref<1xf32, #tpu.memory_space<smem>>
    %11 = vector.broadcast %10 : f32 to vector<8x1024xf32>
    %c0_1 = arith.constant 0 : index
    %12 = memref.load %arg1[%c0_1] : memref<8xf32, #tpu.memory_space<smem>>
    %c0_2 = arith.constant 0 : index
    %13 = memref.load %arg2[%c0_2] : memref<8xf32, #tpu.memory_space<smem>>
    %14 = vector.broadcast %13 : f32 to vector<8x1024xf32>
    %15 = arith.mulf %9, %14 : vector<8x1024xf32>
    %c0_3 = arith.constant 0 : index
    %16 = memref.load %arg3[%c0_3] : memref<8xf32, #tpu.memory_space<smem>>
    %17 = vector.broadcast %16 : f32 to vector<8x1024xf32>
    %18 = arith.addf %15, %17 : vector<8x1024xf32>
    %19 = math.tanh %18 : vector<8x1024xf32>
    %20 = vector.broadcast %12 : f32 to vector<8x1024xf32>
    %21 = arith.mulf %20, %19 : vector<8x1024xf32>
    %22 = arith.addf %11, %21 : vector<8x1024xf32>
    %c1 = arith.constant 1 : index
    %23 = memref.load %arg1[%c1] : memref<8xf32, #tpu.memory_space<smem>>
    %c1_4 = arith.constant 1 : index
    %24 = memref.load %arg2[%c1_4] : memref<8xf32, #tpu.memory_space<smem>>
    %25 = vector.broadcast %24 : f32 to vector<8x1024xf32>
    %26 = arith.mulf %9, %25 : vector<8x1024xf32>
    %c1_5 = arith.constant 1 : index
    %27 = memref.load %arg3[%c1_5] : memref<8xf32, #tpu.memory_space<smem>>
    %28 = vector.broadcast %27 : f32 to vector<8x1024xf32>
    %29 = arith.addf %26, %28 : vector<8x1024xf32>
    %30 = math.tanh %29 : vector<8x1024xf32>
    %31 = vector.broadcast %23 : f32 to vector<8x1024xf32>
    %32 = arith.mulf %31, %30 : vector<8x1024xf32>
    %33 = arith.addf %22, %32 : vector<8x1024xf32>
    %c2 = arith.constant 2 : index
    %34 = memref.load %arg1[%c2] : memref<8xf32, #tpu.memory_space<smem>>
    %c2_6 = arith.constant 2 : index
    %35 = memref.load %arg2[%c2_6] : memref<8xf32, #tpu.memory_space<smem>>
    %36 = vector.broadcast %35 : f32 to vector<8x1024xf32>
    %37 = arith.mulf %9, %36 : vector<8x1024xf32>
    %c2_7 = arith.constant 2 : index
    %38 = memref.load %arg3[%c2_7] : memref<8xf32, #tpu.memory_space<smem>>
    %39 = vector.broadcast %38 : f32 to vector<8x1024xf32>
    %40 = arith.addf %37, %39 : vector<8x1024xf32>
    %41 = math.tanh %40 : vector<8x1024xf32>
    %42 = vector.broadcast %34 : f32 to vector<8x1024xf32>
    %43 = arith.mulf %42, %41 : vector<8x1024xf32>
    %44 = arith.addf %33, %43 : vector<8x1024xf32>
    %c3 = arith.constant 3 : index
    %45 = memref.load %arg1[%c3] : memref<8xf32, #tpu.memory_space<smem>>
    %c3_8 = arith.constant 3 : index
    %46 = memref.load %arg2[%c3_8] : memref<8xf32, #tpu.memory_space<smem>>
    %47 = vector.broadcast %46 : f32 to vector<8x1024xf32>
    %48 = arith.mulf %9, %47 : vector<8x1024xf32>
    %c3_9 = arith.constant 3 : index
    %49 = memref.load %arg3[%c3_9] : memref<8xf32, #tpu.memory_space<smem>>
    %50 = vector.broadcast %49 : f32 to vector<8x1024xf32>
    %51 = arith.addf %48, %50 : vector<8x1024xf32>
    %52 = math.tanh %51 : vector<8x1024xf32>
    %53 = vector.broadcast %45 : f32 to vector<8x1024xf32>
    %54 = arith.mulf %53, %52 : vector<8x1024xf32>
    %55 = arith.addf %44, %54 : vector<8x1024xf32>
    %c4 = arith.constant 4 : index
    %56 = memref.load %arg1[%c4] : memref<8xf32, #tpu.memory_space<smem>>
    %c4_10 = arith.constant 4 : index
    %57 = memref.load %arg2[%c4_10] : memref<8xf32, #tpu.memory_space<smem>>
    %58 = vector.broadcast %57 : f32 to vector<8x1024xf32>
    %59 = arith.mulf %9, %58 : vector<8x1024xf32>
    %c4_11 = arith.constant 4 : index
    %60 = memref.load %arg3[%c4_11] : memref<8xf32, #tpu.memory_space<smem>>
    %61 = vector.broadcast %60 : f32 to vector<8x1024xf32>
    %62 = arith.addf %59, %61 : vector<8x1024xf32>
    %63 = math.tanh %62 : vector<8x1024xf32>
    %64 = vector.broadcast %56 : f32 to vector<8x1024xf32>
    %65 = arith.mulf %64, %63 : vector<8x1024xf32>
    %66 = arith.addf %55, %65 : vector<8x1024xf32>
    %c5 = arith.constant 5 : index
    %67 = memref.load %arg1[%c5] : memref<8xf32, #tpu.memory_space<smem>>
    %c5_12 = arith.constant 5 : index
    %68 = memref.load %arg2[%c5_12] : memref<8xf32, #tpu.memory_space<smem>>
    %69 = vector.broadcast %68 : f32 to vector<8x1024xf32>
    %70 = arith.mulf %9, %69 : vector<8x1024xf32>
    %c5_13 = arith.constant 5 : index
    %71 = memref.load %arg3[%c5_13] : memref<8xf32, #tpu.memory_space<smem>>
    %72 = vector.broadcast %71 : f32 to vector<8x1024xf32>
    %73 = arith.addf %70, %72 : vector<8x1024xf32>
    %74 = math.tanh %73 : vector<8x1024xf32>
    %75 = vector.broadcast %67 : f32 to vector<8x1024xf32>
    %76 = arith.mulf %75, %74 : vector<8x1024xf32>
    %77 = arith.addf %66, %76 : vector<8x1024xf32>
    %c6 = arith.constant 6 : index
    %78 = memref.load %arg1[%c6] : memref<8xf32, #tpu.memory_space<smem>>
    %c6_14 = arith.constant 6 : index
    %79 = memref.load %arg2[%c6_14] : memref<8xf32, #tpu.memory_space<smem>>
    %80 = vector.broadcast %79 : f32 to vector<8x1024xf32>
    %81 = arith.mulf %9, %80 : vector<8x1024xf32>
    %c6_15 = arith.constant 6 : index
    %82 = memref.load %arg3[%c6_15] : memref<8xf32, #tpu.memory_space<smem>>
    %83 = vector.broadcast %82 : f32 to vector<8x1024xf32>
    %84 = arith.addf %81, %83 : vector<8x1024xf32>
    %85 = math.tanh %84 : vector<8x1024xf32>
    %86 = vector.broadcast %78 : f32 to vector<8x1024xf32>
    %87 = arith.mulf %86, %85 : vector<8x1024xf32>
    %88 = arith.addf %77, %87 : vector<8x1024xf32>
    %c7 = arith.constant 7 : index
    %89 = memref.load %arg1[%c7] : memref<8xf32, #tpu.memory_space<smem>>
    %c7_16 = arith.constant 7 : index
    %90 = memref.load %arg2[%c7_16] : memref<8xf32, #tpu.memory_space<smem>>
    %91 = vector.broadcast %90 : f32 to vector<8x1024xf32>
    %92 = arith.mulf %9, %91 : vector<8x1024xf32>
    %c7_17 = arith.constant 7 : index
    %93 = memref.load %arg3[%c7_17] : memref<8xf32, #tpu.memory_space<smem>>
    %94 = vector.broadcast %93 : f32 to vector<8x1024xf32>
    %95 = arith.addf %92, %94 : vector<8x1024xf32>
    %96 = math.tanh %95 : vector<8x1024xf32>
    %97 = vector.broadcast %89 : f32 to vector<8x1024xf32>
    %98 = arith.mulf %97, %96 : vector<8x1024xf32>
    %99 = arith.addf %88, %98 : vector<8x1024xf32>
    %100 = math.absf %99 : vector<8x1024xf32>
    %101 = arith.index_cast %7 : i32 to index
    %c0_18 = arith.constant 0 : index
    %102 = vector.load %arg6[%101, %c0_18] : memref<8x1024xf32, #tpu.memory_space<vmem>>, vector<8x1024xf32>
    tpu.vector_store %arg6[%101, %c0_18], %100 {strides = array<i32>} : memref<8x1024xf32, #tpu.memory_space<vmem>>, vector<8x1024xf32>,
    %c1024_i32_19 = arith.constant 1024 : i32
    %103 = arith.muli %7, %c1024_i32_19 : i32
    %104 = arith.addi %5, %103 : i32
    %c256_i32 = arith.constant 256 : i32
    %105 = arith.subi %c256_i32, %104 : i32
    %106 = vector.broadcast %105 : i32 to vector<8x1024xi32>
    %107 = arith.cmpi slt, %4, %106 : vector<8x1024xi32>
    %cst_20 = arith.constant 0.000000e+00 : f32
    %108 = vector.broadcast %cst_20 : f32 to vector<8x1024xf32>
    %109 = arith.select %107, %100, %108 : vector<8x1024xi1>, vector<8x1024xf32>
    %110 = vector.shape_cast %109 : vector<8x1024xf32> to vector<1x8x1024xf32>
    %cst_21 = arith.constant dense<0.000000e+00> : vector<1xf32>
    %111 = vector.multi_reduction <add>, %110, %cst_21 [1, 2] : vector<1x8x1024xf32> to vector<1xf32>
    %112 = vector.shape_cast %111 : vector<1xf32> to vector<1x1x1xf32>
    %113 = vector.extract %112[0, 0, 0] : f32 from vector<1x1x1xf32>
    %114 = arith.addf %cst, %113 : f32
    %c1_i32 = arith.constant 1 : i32
    %115 = vector.broadcast %114 : f32 to vector<1x8x128xf32>
    %c0_22 = arith.constant 0 : index
    %c0_23 = arith.constant 0 : index
    %c0_24 = arith.constant 0 : index
    %116 = vector.load %arg7[%c0_22, %c0_23, %c0_24] : memref<1x8x128xf32, #tpu.memory_space<vmem>>, vector<1x8x128xf32>
    tpu.vector_store %arg7[%c0_22, %c0_23, %c0_24], %115 {strides = array<i32>} : memref<1x8x128xf32, #tpu.memory_space<vmem>>, vector<1x8x128xf32>,
    return
  }
  func.func @transform_0(%arg0: i32) -> i32 {
    %c0_i32 = arith.constant 0 : i32
    %c0_i32_0 = arith.constant 0 : i32
    return %c0_i32 : i32
  }
  func.func @transform_1(%arg0: i32) -> i32 {
    %c0_i32 = arith.constant 0 : i32
    %c0_i32_0 = arith.constant 0 : i32
    return %c0_i32 : i32
  }
  func.func @transform_2(%arg0: i32) -> i32 {
    %c0_i32 = arith.constant 0 : i32
    %c0_i32_0 = arith.constant 0 : i32
    return %c0_i32 : i32
  }
  func.func @transform_3(%arg0: i32) -> i32 {
    %c0_i32 = arith.constant 0 : i32
    %c0_i32_0 = arith.constant 0 : i32
    return %c0_i32 : i32
  }
  func.func @transform_4(%arg0: i32) -> (i32, i32) {
    %c0_i32 = arith.constant 0 : i32
    %c0_i32_0 = arith.constant 0 : i32
    return %arg0, %c0_i32 : i32, i32
  }
  func.func @transform_5(%arg0: i32) -> (i32, i32) {
    %c0_i32 = arith.constant 0 : i32
    %c0_i32_0 = arith.constant 0 : i32
    return %arg0, %c0_i32 : i32, i32
  }
  func.func @transform_6(%arg0: i32) -> (i32, i32, i32) {
    %c0_i32 = arith.constant 0 : i32
    %c0_i32_0 = arith.constant 0 : i32
    %c0_i32_1 = arith.constant 0 : i32
    return %arg0, %c0_i32, %c0_i32_0 : i32, i32, i32
  }
}

</mosaic_0001>

<bundles_post_ra>
// kernel: tpu_custom_call.1
= control target key start
LH: loop header
LB: loop body
LE: loop exit
PB: predicated region body
PF: predicated region fallthrough
CT: control target
= control target key end

     0   :  { %13 = vsyncpa [#allocation6], 0  ;;  %s1196_s0 = inlined_call_operand.vmem [shape: f32[8], index: 0, kind: input, shape index: {}]   ;;  %s1197_s1 = inlined_call_operand.vmem [shape: f32[8], index: 1, kind: input, shape index: {}]   ;;  %s1198_s2 = inlined_call_operand.vmem [shape: f32[8], index: 2, kind: input, shape index: {}]   ;;  %s1199_s3 = inlined_call_operand.<no memory space> [shape: f32[1], index: 3, kind: input, shape index: {}]   ;;  %s1200_s4 = inlined_call_operand.hbm [shape: f32[8,1024], index: 4, kind: input, shape index: {}]   ;;  %s1201_s5 = inlined_call_operand.hbm [shape: f32[8,1024], index: 5, kind: output, shape index: {0}]   ;;  %s1202_s6 = inlined_call_operand.hbm [shape: f32[1,8,128], index: 6, kind: output, shape index: {1}]  }
   0x1   :  { %14 = vsyncpa [#allocation8], 0 }
   0x2   :  { %15 = vsyncpa [#allocation4], 0 }
   0x3   :  { %16 = vsyncpa [#allocation5], 0  ;;  %s32_s23 = sshll.u32 %s1197_s1, 4  ;;  %s33_s23 = int_to_ptr.vmem [resolvable:$true] %s32_s23 }
   0x4   :  { %17 = vsyncpa [#allocation13], 0  ;;  %s23_s26 = sshll.u32 %s1196_s0, 4  ;;  %s844_s27 = smov [#allocation7]   ;;  %s24_s26 = int_to_ptr.vmem [resolvable:$true] %s23_s26 }
   0x5   :  { %35 = dma.vmem_to_smem %s33_s23, 16, %s844_s27, [#allocation8]  }
   0x6   :  { %s845_s28 = smov [#allocation3]   ;;  %s41_s7 = sshll.u32 %s1198_s2, 4  ;;  %s42_s7 = int_to_ptr.vmem [resolvable:$true] %s41_s7 }
   0x7   :  { %26 = dma.vmem_to_smem %s24_s26, 16, %s845_s28, [#allocation6]  }
   0x8   :  { %s52_s1 = sshll.u32 %s1200_s4, 4  ;;  %s846_s10 = smov [#allocation9]   ;;  %s53_s1 = int_to_ptr.hbm [resolvable:$true] %s52_s1 }
   0x9   :  { %44 = dma.vmem_to_smem %s42_s7, 16, %s846_s10, [#allocation8]  }
   0xa   :  { %s847_s11 = smov [#allocation10]  }
   0xb   :  { %s54_s12 = sshll.u32 %s847_s11, 4  ;;  %s55_s12 = int_to_ptr.vmem [resolvable:$true] %s54_s12 }
   0xc   :  { %57 = dma.hbm_to_vmem [thread:$0]  %s53_s1, 1024, %s55_s12, [#allocation4]  }
   0xd   :  { %834 = dma.done.wait [#allocation6], 16  }
   0xe   :  { %835 = vsyncadd [#allocation6], 4294967280 }
   0xf   :  { %836 = dma.done.wait [#allocation8], 32  }
  0x10   :  { %837 = vsyncadd [#allocation8], 4294967264 }
  0x11   :  { %838 = dma.done.wait [#allocation4], 1024  }
  0x12   :  { %839 = vsyncadd [#allocation4], 4294966272 }
  0x13   :  { %74 = sfence }
  0x14   :  { %v75_v0 = vlaneseq  ;;  %s110_s0 = sld [smem:[#allocation7]]  ;;  %v899_v3 = vld [vmem:[#allocation10] sm:$0xff]  ;;  %v903_v4 = vld [vmem:[#allocation10 + $0x8] sm:$0xff]  ;;  %v905_v5 = vld [vmem:[#allocation10 + $0x10] sm:$0xff]  ;;  %v912_v7 = vstv %s1199_s3  ;;  %s848_s10 = smov [#allocation11]  }
  0x15   :  { %s120_s2 = sld [smem:[#allocation9]]  ;;  %v907_v6 = vld [vmem:[#allocation10 + $0x18] sm:$0xff]  ;;  %v916_v12 = vld [vmem:[#allocation10 + $0x20] sm:$0xff]  ;;  %v918_v13 = vld [vmem:[#allocation10 + $0x28] sm:$0xff]  ;;  %s539_s11 = sshll.u32 %s848_s10, 4  ;;  %s540_s11 = int_to_ptr.vmem [resolvable:$true] %s539_s11 }
  0x16   :  { %v78_v1 = vand.u32 127, %v75_v0  ;;  %v76_v2 = vshrl.u32 %v75_v0, 7  ;;  %s897_s4 = sld [smem:[#allocation3]]  ;;  %v922_v16 = vld [vmem:[#allocation10 + $0x30] sm:$0xff]  ;;  %v924_v19 = vld [vmem:[#allocation10 + $0x38] sm:$0xff] }
  0x17   :  { %s901_s13 = sld [smem:[#allocation7 + $0x1]] }
  0x18   :  { %s914_s16 = sld [smem:[#allocation9 + $0x1]]  ;;  %v79_v8 = vadd.s32 128, %v78_v1  ;;  %v80_v9 = vadd.s32 256, %v78_v1  ;;  %v81_v10 = vadd.s32 384, %v78_v1  ;;  %v82_v11 = vadd.s32 512, %v78_v1 }
  0x19   :  { %v83_v14 = vadd.s32 640, %v78_v1  ;;  %v920_v15 = vmul.u32 1024, %v76_v2  ;;  %v84_v24 = vadd.s32 768, %v78_v1  ;;  %v930_v25 = vadd.s32 896, %v78_v1  ;;  %s942_s3 = sld [smem:[#allocation7 + $0x2]] }
  0x1a   :  { %v111_v17 = vstv %s110_s0  ;;  %s944_s17 = sld [smem:[#allocation3 + $0x1]] }
  0x1b   :  { %v121_v18 = vstv %s120_s2  ;;  %v112_v20 = vmul.f32 %v111_v17, %v899_v3  ;;  %v113_v21 = vmul.f32 %v111_v17, %v903_v4  ;;  %v114_v22 = vmul.f32 %v111_v17, %v905_v5  ;;  %s958_s18 = sld [smem:[#allocation9 + $0x2]]  ;;  %s541_s2 = sshll.u32 %s1201_s5, 4  ;;  %s542_s2 = int_to_ptr.hbm [resolvable:$true] %s541_s2 }
  0x1c   :  { %v115_v23 = vmul.f32 %v111_v17, %v907_v6  ;;  %v116_v26 = vmul.f32 %v111_v17, %v916_v12  ;;  %v117_v27 = vmul.f32 %v111_v17, %v918_v13  ;;  %v118_v28 = vmul.f32 %v111_v17, %v922_v16  ;;  %s986_s19 = sld [smem:[#allocation7 + $0x3]] }
  0x1d   :  { %v122_v29 = vadd.f32 %v121_v18, %v112_v20  ;;  %v123_v30 = vadd.f32 %v121_v18, %v113_v21  ;;  %v124_v31 = vadd.f32 %v121_v18, %v114_v22  ;;  %v936_v32 = vadd.s32 %v920_v15, %v78_v1  ;;  %s996_s20 = sld [smem:[#allocation3 + $0x2]] }
  0x1e   :  { %v119_v33 = vmul.f32 %v111_v17, %v924_v19  ;;  %v125_v34 = vadd.f32 %v121_v18, %v115_v23  ;;  %v940_v35 = vstv %s897_s4  ;;  %v126_v36 = vadd.f32 %v121_v18, %v116_v26  ;;  %s1007_s21 = sld [smem:[#allocation9 + $0x3]]  ;;  %s849_s4 = smov [#allocation12]  }
  0x1f   :  { %v127_v37 = vadd.f32 %v121_v18, %v117_v27  ;;  %598 = vtanh.f32 %v122_v29  ;;  %v157_v38 = vstv %s901_s13  ;;  %v167_v41 = vstv %s914_s16  ;;  %s1022_s22 = sld [smem:[#allocation7 + $0x4]]  ;;  %s550_s13 = sshll.u32 %s849_s4, 4  ;;  %s551_s13 = int_to_ptr.vmem [resolvable:$true] %s550_s13 }
  0x20   :  { %600 = vtanh.f32 %v123_v30  ;;  %v158_v39 = vmul.f32 %v157_v38, %v899_v3  ;;  %v159_v40 = vmul.f32 %v157_v38, %v903_v4  ;;  %v951_v42 = vadd.s32 %v920_v15, %v79_v8  ;;  %s1034_s23 = sld [smem:[#allocation3 + $0x3]]  ;;  %s552_s16 = sshll.u32 %s1202_s6, 4  ;;  %s553_s16 = int_to_ptr.hbm [resolvable:$true] %s552_s16 }
  0x21   :  { %v128_v43 = vadd.f32 %v121_v18, %v118_v28  ;;  %602 = vtanh.f32 %v124_v31  ;;  %v160_v44 = vmul.f32 %v157_v38, %v905_v5  ;;  %v955_v45 = vadd.s32 %v920_v15, %v80_v9  ;;  %s1039_s24 = sld [smem:[#allocation9 + $0x4]] }
  0x22   :  { %v129_v46 = vadd.f32 %v121_v18, %v119_v33  ;;  %604 = vtanh.f32 %v125_v34  ;;  %v161_v47 = vmul.f32 %v157_v38, %v907_v6  ;;  %v961_v48 = vadd.s32 %v920_v15, %v81_v10  ;;  %s1050_s25 = sld [smem:[#allocation3 + $0x4]] }
  0x23   :  { %606 = vtanh.f32 %v126_v36  ;;  %v162_v49 = vmul.f32 %v157_v38, %v916_v12  ;;  %v168_v50 = vadd.f32 %v167_v41, %v158_v39  ;;  %v163_v51 = vmul.f32 %v157_v38, %v918_v13  ;;  %s1056_s26 = sld [smem:[#allocation7 + $0x5]] }
  0x24   :  { %608 = vtanh.f32 %v127_v37  ;;  %v164_v52 = vmul.f32 %v157_v38, %v922_v16  ;;  %v169_v53 = vadd.f32 %v167_v41, %v159_v40  ;;  %v967_v55 = vadd.s32 %v920_v15, %v82_v11  ;;  %s1069_s27 = sld [smem:[#allocation9 + $0x5]] }
  0x25   :  { %v599_v54 = vpop.eup %598  ;;  %610 = vtanh.f32 %v128_v43  ;;  %v165_v56 = vmul.f32 %v157_v38, %v924_v19  ;;  %v170_v57 = vadd.f32 %v167_v41, %v160_v44  ;;  %v971_v59 = vadd.s32 %v920_v15, %v83_v14  ;;  %s1079_s28 = sld [smem:[#allocation7 + $0x6]] }
  0x26   :  { %v601_v58 = vpop.eup %600  ;;  %612 = vtanh.f32 %v129_v46  ;;  %v171_v60 = vadd.f32 %v167_v41, %v161_v47  ;;  %v203_v61 = vstv %s942_s3  ;;  %v975_v63 = vadd.s32 %v920_v15, %v84_v24  ;;  %s1086_s29 = sld [smem:[#allocation3 + $0x5]] }
  0x27   :  { %v603_v62 = vpop.eup %602  ;;  %v172_v0 = vadd.f32 %v167_v41, %v162_v49  ;;  %614 = vtanh.f32 %v168_v50  ;;  %v978_v1 = vstv %s944_s17  ;;  %v139_v8 = vmul.f32 %v599_v54, %v940_v35  ;;  %s1092_s30 = sld [smem:[#allocation9 + $0x6]] }
  0x28   :  { %v605_v2 = vpop.eup %604  ;;  %v173_v9 = vadd.f32 %v167_v41, %v163_v51  ;;  %v174_v10 = vadd.f32 %v167_v41, %v164_v52  ;;  %616 = vtanh.f32 %v169_v53  ;;  %v175_v14 = vadd.f32 %v167_v41, %v165_v56  ;;  %s1101_s7 = sld [smem:[#allocation7 + $0x7]] }
  0x29   :  { %v607_v11 = vpop.eup %606  ;;  %618 = vtanh.f32 %v170_v57  ;;  %v204_v17 = vmul.f32 %v203_v61, %v899_v3  ;;  %v205_v18 = vmul.f32 %v203_v61, %v903_v4  ;;  %v140_v21 = vmul.f32 %v601_v58, %v940_v35  ;;  %s1104_s8 = sld [smem:[#allocation3 + $0x6]] }
  0x2a   :  { %v609_v20 = vpop.eup %608  ;;  %620 = vtanh.f32 %v171_v60  ;;  %v206_v22 = vmul.f32 %v203_v61, %v905_v5  ;;  %v213_v23 = vstv %s958_s18  ;;  %v141_v26 = vmul.f32 %v603_v62, %v940_v35  ;;  %s1125_s9 = sld [smem:[#allocation9 + $0x7]] }
  0x2b   :  { %v611_v24 = vpop.eup %610  ;;  %v207_v27 = vmul.f32 %v203_v61, %v907_v6  ;;  %v208_v28 = vmul.f32 %v203_v61, %v916_v12  ;;  %v209_v29 = vmul.f32 %v203_v61, %v918_v13  ;;  %v142_v31 = vmul.f32 %v605_v2, %v940_v35  ;;  %s1146_s1 = sld [smem:[#allocation3 + $0x7]] }
  0x2c   :  { %v613_v30 = vpop.eup %612  ;;  %v143_v33 = vmul.f32 %v607_v11, %v940_v35  ;;  %v147_v34 = vadd.f32 %v139_v8, %v912_v7  ;;  %622 = vtanh.f32 %v172_v0  ;;  %v144_v37 = vmul.f32 %v609_v20, %v940_v35 }
  0x2d   :  { %v615_v36 = vpop.eup %614  ;;  %624 = vtanh.f32 %v173_v9  ;;  %v210_v38 = vmul.f32 %v203_v61, %v922_v16  ;;  %v214_v39 = vadd.f32 %v213_v23, %v204_v17  ;;  %v148_v41 = vadd.f32 %v140_v21, %v912_v7 }
  0x2e   :  { %v617_v40 = vpop.eup %616  ;;  %626 = vtanh.f32 %v174_v10  ;;  %v211_v43 = vmul.f32 %v203_v61, %v924_v19  ;;  %v215_v44 = vadd.f32 %v213_v23, %v205_v18  ;;  %v145_v47 = vmul.f32 %v611_v24, %v940_v35 }
  0x2f   :  { %v619_v46 = vpop.eup %618  ;;  %v146_v49 = vmul.f32 %v613_v30, %v940_v35  ;;  %628 = vtanh.f32 %v175_v14  ;;  %v216_v50 = vadd.f32 %v213_v23, %v206_v22  ;;  %v149_v52 = vadd.f32 %v141_v26, %v912_v7 }
  0x30   :  { %v621_v51 = vpop.eup %620  ;;  %v150_v53 = vadd.f32 %v142_v31, %v912_v7  ;;  %v151_v54 = vadd.f32 %v143_v33, %v912_v7  ;;  %v185_v56 = vmul.f32 %v615_v36, %v978_v1  ;;  %v152_v57 = vadd.f32 %v144_v37, %v912_v7 }
  0x31   :  { %v186_v58 = vmul.f32 %v617_v40, %v978_v1  ;;  %v217_v60 = vadd.f32 %v213_v23, %v207_v27  ;;  %630 = vtanh.f32 %v214_v39  ;;  %v187_v61 = vmul.f32 %v619_v46, %v978_v1 }
  0x32   :  { %v623_v35 = vpop.eup %622  ;;  %v218_v62 = vadd.f32 %v213_v23, %v208_v28  ;;  %632 = vtanh.f32 %v215_v44  ;;  %v249_v0 = vstv %s986_s19  ;;  %v153_v8 = vadd.f32 %v145_v47, %v912_v7 }
  0x33   :  { %v625_v2 = vpop.eup %624  ;;  %v154_v9 = vadd.f32 %v146_v49, %v912_v7  ;;  %v188_v10 = vmul.f32 %v621_v51, %v978_v1  ;;  %634 = vtanh.f32 %v216_v50  ;;  %v193_v14 = vadd.f32 %v185_v56, %v147_v34 }
  0x34   :  { %v627_v11 = vpop.eup %626  ;;  %v219_v17 = vadd.f32 %v213_v23, %v209_v29  ;;  %v220_v18 = vadd.f32 %v213_v23, %v210_v38  ;;  %v221_v20 = vadd.f32 %v213_v23, %v211_v43  ;;  %v194_v22 = vadd.f32 %v186_v58, %v148_v41 }
  0x35   :  { %v629_v21 = vpop.eup %628  ;;  %636 = vtanh.f32 %v217_v60  ;;  %v1017_v24 = vstv %s996_s20  ;;  %v250_v26 = vmul.f32 %v249_v0, %v899_v3  ;;  %v189_v27 = vmul.f32 %v623_v35, %v978_v1 }
  0x36   :  { %v195_v28 = vadd.f32 %v187_v61, %v149_v52  ;;  %638 = vtanh.f32 %v218_v62  ;;  %v251_v7 = vmul.f32 %v249_v0, %v903_v4  ;;  %v190_v29 = vmul.f32 %v625_v2, %v978_v1 }
  0x37   :  { %v631_v30 = vpop.eup %630  ;;  %v191_v23 = vmul.f32 %v627_v11, %v978_v1  ;;  %v1026_v31 = vadd.f32 %v188_v10, %v150_v53  ;;  %v252_v33 = vmul.f32 %v249_v0, %v905_v5  ;;  %v192_v36 = vmul.f32 %v629_v21, %v978_v1 }
  0x38   :  { %v633_v34 = vpop.eup %632  ;;  %640 = vtanh.f32 %v219_v17  ;;  %v253_v37 = vmul.f32 %v249_v0, %v907_v6  ;;  %v259_v38 = vstv %s1007_s21  ;;  %v231_v40 = vmul.f32 %v631_v30, %v1017_v24 }
  0x39   :  { %v635_v39 = vpop.eup %634  ;;  %642 = vtanh.f32 %v220_v18  ;;  %v254_v41 = vmul.f32 %v249_v0, %v916_v12  ;;  %v260_v43 = vadd.f32 %v259_v38, %v250_v26  ;;  %v197_v44 = vadd.f32 %v189_v27, %v151_v54 }
  0x3a   :  { %644 = vtanh.f32 %v221_v20  ;;  %v255_v46 = vmul.f32 %v249_v0, %v918_v13  ;;  %v261_v47 = vadd.f32 %v259_v38, %v251_v7  ;;  %v198_v1 = vadd.f32 %v190_v29, %v152_v57 }
  0x3b   :  { %v637_v49 = vpop.eup %636  ;;  %v232_v50 = vmul.f32 %v633_v34, %v1017_v24  ;;  %v256_v51 = vmul.f32 %v249_v0, %v922_v16  ;;  %v262_v52 = vadd.f32 %v259_v38, %v252_v33  ;;  %v199_v56 = vadd.f32 %v191_v23, %v153_v8 }
  0x3c   :  { %v639_v53 = vpop.eup %638  ;;  %v200_v58 = vadd.f32 %v192_v36, %v154_v9  ;;  %v233_v54 = vmul.f32 %v635_v39, %v1017_v24  ;;  %v263_v60 = vadd.f32 %v259_v38, %v253_v37  ;;  %v1042_v35 = vadd.f32 %v231_v40, %v193_v14 }
  0x3d   :  { %v257_v61 = vmul.f32 %v249_v0, %v924_v19  ;;  %v264_v62 = vadd.f32 %v259_v38, %v254_v41  ;;  %646 = vtanh.f32 %v260_v43  ;;  %v234_v2 = vmul.f32 %v637_v49, %v1017_v24 }
  0x3e   :  { %v641_v57 = vpop.eup %640  ;;  %v265_v10 = vadd.f32 %v259_v38, %v255_v46  ;;  %648 = vtanh.f32 %v261_v47  ;;  %v295_v11 = vstv %s1022_s22  ;;  %v235_v18 = vmul.f32 %v639_v53, %v1017_v24 }
  0x3f   :  { %v643_v17 = vpop.eup %642  ;;  %v1048_v8 = vadd.f32 %v232_v50, %v194_v22  ;;  %v266_v9 = vadd.f32 %v259_v38, %v256_v51  ;;  %650 = vtanh.f32 %v262_v52  ;;  %v1052_v0 = vadd.f32 %v233_v54, %v195_v28 }
  0x40   :  { %v645_v14 = vpop.eup %644  ;;  %652 = vtanh.f32 %v263_v60  ;;  %v296_v20 = vmul.f32 %v295_v11, %v899_v3  ;;  %v297_v21 = vmul.f32 %v295_v11, %v903_v4  ;;  %v236_v26 = vmul.f32 %v641_v57, %v1017_v24 }
  0x41   :  { %v267_v22 = vadd.f32 %v259_v38, %v257_v61  ;;  %654 = vtanh.f32 %v264_v62  ;;  %v298_v27 = vmul.f32 %v295_v11, %v905_v5  ;;  %v237_v7 = vmul.f32 %v643_v17, %v1017_v24 }
  0x42   :  { %656 = vtanh.f32 %v265_v10  ;;  %v276_v30 = vstv %s1034_s23  ;;  %v299_v28 = vmul.f32 %v295_v11, %v907_v6  ;;  %v238_v23 = vmul.f32 %v645_v14, %v1017_v24 }
  0x43   :  { %v647_v29 = vpop.eup %646  ;;  %658 = vtanh.f32 %v266_v9  ;;  %v300_v33 = vmul.f32 %v295_v11, %v916_v12  ;;  %v305_v34 = vstv %s1039_s24  ;;  %v242_v37 = vadd.f32 %v234_v2, %v1026_v31 }
  0x44   :  { %v649_v36 = vpop.eup %648  ;;  %v301_v38 = vmul.f32 %v295_v11, %v918_v13  ;;  %v306_v39 = vadd.f32 %v305_v34, %v296_v20  ;;  %v307_v40 = vadd.f32 %v305_v34, %v297_v21  ;;  %v243_v43 = vadd.f32 %v235_v18, %v197_v44 }
  0x45   :  { %v651_v41 = vpop.eup %650  ;;  %660 = vtanh.f32 %v267_v22  ;;  %v302_v46 = vmul.f32 %v295_v11, %v922_v16  ;;  %v308_v47 = vadd.f32 %v305_v34, %v298_v27  ;;  %v244_v49 = vadd.f32 %v236_v26, %v198_v1 }
  0x46   :  { %v653_v24 = vpop.eup %652  ;;  %v277_v50 = vmul.f32 %v647_v29, %v276_v30  ;;  %v303_v51 = vmul.f32 %v295_v11, %v924_v19  ;;  %v309_v31 = vadd.f32 %v305_v34, %v299_v28  ;;  %v245_v53 = vadd.f32 %v237_v7, %v199_v56 }
  0x47   :  { %v655_v52 = vpop.eup %654  ;;  %v246_v54 = vadd.f32 %v238_v23, %v200_v58  ;;  %v310_v60 = vadd.f32 %v305_v34, %v300_v33  ;;  %662 = vtanh.f32 %v306_v39  ;;  %v311_v61 = vadd.f32 %v305_v34, %v301_v38 }
  0x48   :  { %v657_v44 = vpop.eup %656  ;;  %664 = vtanh.f32 %v307_v40  ;;  %v1073_v62 = vstv %s1050_s25  ;;  %v341_v57 = vstv %s1056_s26  ;;  %v278_v10 = vmul.f32 %v649_v36, %v276_v30 }
  0x49   :  { %v659_v2 = vpop.eup %658  ;;  %v279_v17 = vmul.f32 %v651_v41, %v276_v30  ;;  %v312_v18 = vadd.f32 %v305_v34, %v302_v46  ;;  %666 = vtanh.f32 %v308_v47  ;;  %v285_v1 = vadd.f32 %v277_v50, %v1042_v35 }
  0x4a   :  { %v313_v11 = vadd.f32 %v305_v34, %v303_v51  ;;  %668 = vtanh.f32 %v309_v31  ;;  %v342_v56 = vmul.f32 %v341_v57, %v899_v3  ;;  %v280_v9 = vmul.f32 %v653_v24, %v276_v30 }
  0x4b   :  { %v661_v58 = vpop.eup %660  ;;  %v281_v14 = vmul.f32 %v655_v52, %v276_v30  ;;  %670 = vtanh.f32 %v310_v60  ;;  %v343_v20 = vmul.f32 %v341_v57, %v903_v4  ;;  %v282_v21 = vmul.f32 %v657_v44, %v276_v30 }
  0x4c   :  { %v283_v26 = vmul.f32 %v659_v2, %v276_v30  ;;  %672 = vtanh.f32 %v311_v61  ;;  %v344_v22 = vmul.f32 %v341_v57, %v905_v5  ;;  %v286_v35 = vadd.f32 %v278_v10, %v1048_v8 }
  0x4d   :  { %v663_v27 = vpop.eup %662  ;;  %674 = vtanh.f32 %v312_v18  ;;  %v345_v7 = vmul.f32 %v341_v57, %v907_v6  ;;  %v351_v28 = vstv %s1069_s27  ;;  %v284_v23 = vmul.f32 %v661_v58, %v276_v30 }
  0x4e   :  { %v665_v29 = vpop.eup %664  ;;  %v287_v33 = vadd.f32 %v279_v17, %v1052_v0  ;;  %676 = vtanh.f32 %v313_v11  ;;  %v352_v34 = vadd.f32 %v351_v28, %v342_v56  ;;  %v288_v38 = vadd.f32 %v280_v9, %v242_v37 }
  0x4f   :  { %v667_v36 = vpop.eup %666  ;;  %v289_v39 = vadd.f32 %v281_v14, %v243_v43  ;;  %v346_v40 = vmul.f32 %v341_v57, %v916_v12  ;;  %v353_v41 = vadd.f32 %v351_v28, %v343_v20  ;;  %v290_v8 = vadd.f32 %v282_v21, %v244_v49 }
  0x50   :  { %v669_v46 = vpop.eup %668  ;;  %v291_v47 = vadd.f32 %v283_v26, %v245_v53  ;;  %v323_v24 = vmul.f32 %v663_v27, %v1073_v62  ;;  %v354_v50 = vadd.f32 %v351_v28, %v344_v22  ;;  %v347_v0 = vmul.f32 %v341_v57, %v918_v13 }
  0x51   :  { %v671_v30 = vpop.eup %670  ;;  %v348_v51 = vmul.f32 %v341_v57, %v922_v16  ;;  %v355_v31 = vadd.f32 %v351_v28, %v345_v7  ;;  %678 = vtanh.f32 %v352_v34  ;;  %v292_v43 = vadd.f32 %v284_v23, %v246_v54 }
  0x52   :  { %v673_v37 = vpop.eup %672  ;;  %v324_v52 = vmul.f32 %v665_v29, %v1073_v62  ;;  %v325_v49 = vmul.f32 %v667_v36, %v1073_v62  ;;  %v349_v53 = vmul.f32 %v341_v57, %v924_v19  ;;  %v326_v44 = vmul.f32 %v669_v46, %v1073_v62 }
  0x53   :  { %v675_v60 = vpop.eup %674  ;;  %v356_v61 = vadd.f32 %v351_v28, %v346_v40  ;;  %680 = vtanh.f32 %v353_v41  ;;  %v387_v2 = vstv %s1079_s28  ;;  %v327_v17 = vmul.f32 %v671_v30, %v1073_v62 }
  0x54   :  { %v677_v10 = vpop.eup %676  ;;  %v328_v18 = vmul.f32 %v673_v37, %v1073_v62  ;;  %v331_v11 = vadd.f32 %v323_v24, %v285_v1  ;;  %682 = vtanh.f32 %v354_v50  ;;  %v329_v54 = vmul.f32 %v675_v60, %v1073_v62 }
  0x55   :  { %v357_v56 = vadd.f32 %v351_v28, %v347_v0  ;;  %v358_v57 = vadd.f32 %v351_v28, %v348_v51  ;;  %684 = vtanh.f32 %v355_v31  ;;  %v332_v58 = vadd.f32 %v324_v52, %v286_v35 }
  0x56   :  { %v333_v9 = vadd.f32 %v325_v49, %v287_v33  ;;  %v359_v14 = vadd.f32 %v351_v28, %v349_v53  ;;  %v388_v20 = vmul.f32 %v387_v2, %v899_v3  ;;  %v330_v26 = vmul.f32 %v677_v10, %v1073_v62 }
  0x57   :  { %v679_v21 = vpop.eup %678  ;;  %v1108_v1 = vadd.f32 %v326_v44, %v288_v38  ;;  %v1111_v22 = vstv %s1086_s29  ;;  %v389_v27 = vmul.f32 %v387_v2, %v903_v4  ;;  %v1114_v7 = vadd.f32 %v327_v17, %v289_v39 }
  0x58   :  { %v1116_v29 = vadd.f32 %v328_v18, %v290_v8  ;;  %686 = vtanh.f32 %v356_v61  ;;  %v390_v35 = vmul.f32 %v387_v2, %v905_v5  ;;  %v1119_v28 = vadd.f32 %v329_v54, %v291_v47 }
  0x59   :  { %v681_v23 = vpop.eup %680  ;;  %688 = vtanh.f32 %v357_v56  ;;  %v391_v33 = vmul.f32 %v387_v2, %v907_v6  ;;  %v397_v62 = vstv %s1092_s30  ;;  %v369_v36 = vmul.f32 %v679_v21, %v1111_v22 }
  0x5a   :  { %v683_v34 = vpop.eup %682  ;;  %690 = vtanh.f32 %v358_v57  ;;  %v392_v38 = vmul.f32 %v387_v2, %v916_v12  ;;  %v398_v39 = vadd.f32 %v397_v62, %v388_v20  ;;  %v1127_v41 = vadd.f32 %v330_v26, %v292_v43 }
  0x5b   :  { %v685_v40 = vpop.eup %684  ;;  %692 = vtanh.f32 %v359_v14  ;;  %v393_v46 = vmul.f32 %v387_v2, %v918_v13  ;;  %v399_v8 = vadd.f32 %v397_v62, %v389_v27  ;;  %v370_v47 = vmul.f32 %v681_v23, %v1111_v22 }
  0x5c   :  { %v394_v24 = vmul.f32 %v387_v2, %v922_v16  ;;  %v400_v50 = vadd.f32 %v397_v62, %v390_v35  ;;  %v433_v30 = vstv %s1101_s7  ;;  %v371_v0 = vmul.f32 %v683_v34, %v1111_v22 }
  0x5d   :  { %v395_v51 = vmul.f32 %v387_v2, %v924_v19  ;;  %v401_v31 = vadd.f32 %v397_v62, %v391_v33  ;;  %v1136_v37 = vstv %s1104_s8  ;;  %v372_v43 = vmul.f32 %v685_v40, %v1111_v22 }
  0x5e   :  { %v687_v52 = vpop.eup %686  ;;  %v1139_v49 = vadd.f32 %v369_v36, %v331_v11  ;;  %v402_v53 = vadd.f32 %v397_v62, %v392_v38  ;;  %694 = vtanh.f32 %v398_v39  ;;  %v403_v44 = vadd.f32 %v397_v62, %v393_v46 }
  0x5f   :  { %v689_v60 = vpop.eup %688  ;;  %696 = vtanh.f32 %v399_v8  ;;  %v434_v61 = vmul.f32 %v433_v30, %v899_v3  ;;  %v435_v10 = vmul.f32 %v433_v30, %v903_v4  ;;  %v378_v2 = vadd.f32 %v370_v47, %v332_v58 }
  0x60   :  { %v691_v17 = vpop.eup %690  ;;  %v404_v18 = vadd.f32 %v397_v62, %v394_v24  ;;  %698 = vtanh.f32 %v400_v50  ;;  %v436_v54 = vmul.f32 %v433_v30, %v905_v5  ;;  %v373_v11 = vmul.f32 %v687_v52, %v1111_v22 }
  0x61   :  { %v693_v56 = vpop.eup %692  ;;  %v405_v57 = vadd.f32 %v397_v62, %v395_v51  ;;  %700 = vtanh.f32 %v401_v31  ;;  %v437_v14 = vmul.f32 %v433_v30, %v907_v6  ;;  %v379_v20 = vadd.f32 %v371_v0, %v333_v9 }
  0x62   :  { %702 = vtanh.f32 %v402_v53  ;;  %v438_v3 = vmul.f32 %v433_v30, %v916_v12  ;;  %v443_v4 = vstv %s1125_s9  ;;  %v439_v58 = vmul.f32 %v433_v30, %v918_v13 }
  0x63   :  { %704 = vtanh.f32 %v403_v44  ;;  %v444_v21 = vadd.f32 %v443_v4, %v434_v61  ;;  %v445_v26 = vadd.f32 %v443_v4, %v435_v10  ;;  %v374_v27 = vmul.f32 %v689_v60, %v1111_v22 }
  0x64   :  { %v695_v5 = vpop.eup %694  ;;  %706 = vtanh.f32 %v404_v18  ;;  %v440_v35 = vmul.f32 %v433_v30, %v922_v16  ;;  %v446_v23 = vadd.f32 %v443_v4, %v436_v54  ;;  %v375_v9 = vmul.f32 %v691_v17, %v1111_v22 }
  0x65   :  { %v697_v6 = vpop.eup %696  ;;  %708 = vtanh.f32 %v405_v57  ;;  %v441_v33 = vmul.f32 %v433_v30, %v924_v19  ;;  %v447_v12 = vadd.f32 %v443_v4, %v437_v14  ;;  %v376_v34 = vmul.f32 %v693_v56, %v1111_v22 }
  0x66   :  { %v699_v62 = vpop.eup %698  ;;  %v380_v13 = vadd.f32 %v372_v43, %v1108_v1  ;;  %v448_v36 = vadd.f32 %v443_v4, %v438_v3  ;;  %710 = vtanh.f32 %v444_v21  ;;  %v381_v39 = vadd.f32 %v373_v11, %v1114_v7 }
  0x67   :  { %v701_v38 = vpop.eup %700  ;;  %v415_v16 = vmul.f32 %v695_v5, %v1136_v37  ;;  %v449_v40 = vadd.f32 %v443_v4, %v439_v58  ;;  %712 = vtanh.f32 %v445_v26  ;;  %v382_v8 = vadd.f32 %v374_v27, %v1116_v29 }
  0x68   :  { %v703_v46 = vpop.eup %702  ;;  %v416_v19 = vmul.f32 %v697_v6, %v1136_v37  ;;  %v450_v47 = vadd.f32 %v443_v4, %v440_v35  ;;  %714 = vtanh.f32 %v446_v23  ;;  %v383_v1 = vadd.f32 %v375_v9, %v1119_v28 }
  0x69   :  { %v705_v22 = vpop.eup %704  ;;  %v417_v24 = vmul.f32 %v699_v62, %v1136_v37  ;;  %v451_v50 = vadd.f32 %v443_v4, %v441_v33  ;;  %716 = vtanh.f32 %v447_v12  ;;  %v384_v30 = vadd.f32 %v376_v34, %v1127_v41 }
  0x6a   :  { %v707_v7 = vpop.eup %706  ;;  %v418_v0 = vmul.f32 %v701_v38, %v1136_v37  ;;  %718 = vtanh.f32 %v448_v36  ;;  %v460_v51 = vstv %s1146_s1  ;;  %v419_v29 = vmul.f32 %v703_v46, %v1136_v37 }
  0x6b   :  { %v709_v31 = vpop.eup %708  ;;  %v423_v52 = vadd.f32 %v415_v16, %v1139_v49  ;;  %720 = vtanh.f32 %v449_v40  ;;  %vm499_vm0 = vcmp.lt.s32.totalorder %v936_v32, 256  ;;  %v420_v43 = vmul.f32 %v705_v22, %v1136_v37 }
  0x6c   :  { %v711_v28 = vpop.eup %710  ;;  %v424_v53 = vadd.f32 %v416_v19, %v378_v2  ;;  %722 = vtanh.f32 %v450_v47  ;;  %vm500_vm1 = vcmp.lt.s32.totalorder %v951_v42, 256  ;;  %v421_v60 = vmul.f32 %v707_v7, %v1136_v37 }
  0x6d   :  { %v713_v41 = vpop.eup %712  ;;  %v425_v44 = vadd.f32 %v417_v24, %v379_v20  ;;  %724 = vtanh.f32 %v451_v50  ;;  %v461_v61 = vmul.f32 %v711_v28, %v460_v51  ;;  %v422_v17 = vmul.f32 %v709_v31, %v1136_v37 }
  0x6e   :  { %v715_v10 = vpop.eup %714  ;;  %v426_v49 = vadd.f32 %v418_v0, %v380_v13  ;;  %v462_v18 = vmul.f32 %v713_v41, %v460_v51  ;;  %vm501_vm2 = vcmp.lt.s32.totalorder %v955_v45, 256  ;;  %v427_v56 = vadd.f32 %v419_v29, %v381_v39 }
  0x6f   :  { %v717_v54 = vpop.eup %716  ;;  %v463_v11 = vmul.f32 %v715_v10, %v460_v51  ;;  %v469_v2 = vadd.f32 %v461_v61, %v423_v52  ;;  %vm502_vm3 = vcmp.lt.s32.totalorder %v961_v48, 256  ;;  %v428_v14 = vadd.f32 %v420_v43, %v382_v8 }
  0x70   :  { %v719_v57 = vpop.eup %718  ;;  %v464_v3 = vmul.f32 %v717_v54, %v460_v51  ;;  %v470_v4 = vadd.f32 %v462_v18, %v424_v53  ;;  %vm503_vm4 = vcmp.lt.s32.totalorder %v967_v55, 256  ;;  %v429_v58 = vadd.f32 %v421_v60, %v383_v1 }
  0x71   :  { %v721_v20 = vpop.eup %720  ;;  %v465_v21 = vmul.f32 %v719_v57, %v460_v51  ;;  %v471_v37 = vadd.f32 %v463_v11, %v425_v44  ;;  %v477_v26 = vand.u32 2147483647, %v469_v2  ;;  %v430_v27 = vadd.f32 %v422_v17, %v384_v30 }
  0x72   :  { %v723_v5 = vpop.eup %722  ;;  %v466_v35 = vmul.f32 %v721_v20, %v460_v51  ;;  %v472_v23 = vadd.f32 %v464_v3, %v426_v49  ;;  %v478_v6 = vand.u32 2147483647, %v470_v4  ;;  %v94_v22 = vadd.s32 %v920_v15, %v930_v25 }
  0x73   :  { %v725_v9 = vpop.eup %724  ;;  %v467_v33 = vmul.f32 %v723_v5, %v460_v51  ;;  %v473_v12 = vadd.f32 %v465_v21, %v427_v56  ;;  %v479_v62 = vand.u32 2147483647, %v471_v37  ;;  %487 = vst [vmem:[#allocation11] sm:$0xff] %v477_v26  ;;  %v507_v34 = vsel %vm499_vm0, %v477_v26, 0.0 }
  0x74   :  { %v468_v13 = vmul.f32 %v725_v9, %v460_v51  ;;  %v474_v36 = vadd.f32 %v466_v35, %v428_v14  ;;  %v480_v38 = vand.u32 2147483647, %v472_v23  ;;  %488 = vst [vmem:[#allocation11 + $0x8] sm:$0xff] %v478_v6  ;;  %v508_v39 = vsel %vm500_vm1, %v478_v6, 0.0 }
  0x75   :  { %v475_v16 = vadd.f32 %v467_v33, %v429_v58  ;;  %v481_v40 = vand.u32 2147483647, %v473_v12  ;;  %489 = vst [vmem:[#allocation11 + $0x10] sm:$0xff] %v479_v62  ;;  %v509_v46 = vsel %vm501_vm2, %v479_v62, 0.0  ;;  %v515_v8 = vadd.f32 %v508_v39, %v507_v34 }
  0x76   :  { %v476_v19 = vadd.f32 %v468_v13, %v430_v27  ;;  %v482_v47 = vand.u32 2147483647, %v474_v36  ;;  %490 = vst [vmem:[#allocation11 + $0x18] sm:$0xff] %v480_v38  ;;  %v510_v32 = vsel %vm502_vm3, %v480_v38, 0.0  ;;  %vm504_vm5 = vcmp.lt.s32.totalorder %v971_v59, 256 }
  0x77   :  { %v483_v1 = vand.u32 2147483647, %v475_v16  ;;  %491 = vst [vmem:[#allocation11 + $0x20] sm:$0xff] %v481_v40  ;;  %v516_v42 = vadd.f32 %v515_v8, %v509_v46  ;;  %v511_v45 = vsel %vm503_vm4, %v481_v40, 0.0  ;;  %vm505_vm6 = vcmp.lt.s32.totalorder %v975_v63, 256 }
  0x78   :  { %v484_v24 = vand.u32 2147483647, %v476_v19  ;;  %492 = vst [vmem:[#allocation11 + $0x28] sm:$0xff] %v482_v47  ;;  %v512_v48 = vsel %vm504_vm5, %v482_v47, 0.0  ;;  %vm506_vm7 = vcmp.lt.s32.totalorder %v94_v22, 256 }
  0x79   :  { %493 = vst [vmem:[#allocation11 + $0x30] sm:$0xff] %v483_v1  ;;  %v517_v50 = vadd.f32 %v516_v42, %v510_v32  ;;  %v513_v30 = vsel %vm505_vm6, %v483_v1, 0.0 }
  0x7a   :  { %494 = vst [vmem:[#allocation11 + $0x38] sm:$0xff] %v484_v24  ;;  %v514_v25 = vsel %vm506_vm7, %v484_v24, 0.0 }
  0x7b   :  { %v518_v7 = vadd.f32 %v517_v50, %v511_v45  ;;  %544 = dma.vmem_to_hbm [thread:$0]  %s540_s11, 1024, %s542_s2, [#allocation5]  }
  0x7d   :  { %v519_v15 = vadd.f32 %v518_v7, %v512_v48 }
  0x7f   :  { %v520_v0 = vadd.f32 %v519_v15, %v513_v30 }
  0x81   :  { %v521_v51 = vadd.f32 %v520_v0, %v514_v25 }
  0x83   :  { %522 = vadd.xlane.f32.xlu0 %v521_v51 }
  0xf6   :  { %v523_v55 = vpop.xlane.xlu0 %522 }
  0xf7   :  { %v524_v59 = vrot.slane %v523_v55, 4 }
  0xf9   :  { %v525_v63 = vadd.f32 %v524_v59, %v523_v55 }
  0xfb   :  { %v526_v31 = vrot.slane %v525_v63, 2 }
  0xfd   :  { %v527_v29 = vadd.f32 %v526_v31, %v525_v63 }
  0xff   :  { %v528_v52 = vrot.slane %v527_v29, 1 }
 0x101   :  { %v529_v28 = vadd.f32 %v528_v52, %v527_v29 }
 0x103   :  { %590 = vpush %v529_v28 }
 0x134   :  { %s591_s3 = spop %590 }
 0x135   :  { %v532_v43 = vstv %s591_s3 }
 0x136   :  { %533 = vst [vmem:[#allocation12] sm:$0xff] %v532_v43 }
 0x137   :  { %555 = dma.vmem_to_hbm [thread:$0]  %s551_s13, 128, %s553_s16, [#allocation13]  }
 0x138   :  { %840 = dma.done.wait [#allocation5], 1024  }
 0x139   :  { %841 = vsyncadd [#allocation5], 4294966272 }
 0x13a   :  { %842 = dma.done.wait [#allocation13], 128  }
 0x13b   :  { %843 = vsyncadd [#allocation13], 4294967168 }
 0x13c   :  { %564 = vsyncpa [#allocation4], 1 }
 0x13d   :  { %565 = vsyncpa [#allocation5], 1 }
 0x13e   :  { %566 = vsyncpa [#allocation13], 1 }
 0x13f   :  { %567 = vsyncpa [#allocation6], 1 }
 0x140   :  { %568 = vsyncpa [#allocation8], 1 }

</bundles_post_ra>
